<compile_context>
chip_gen: v7x
topology: tpu7x:2x2x1
jax: 0.10.0
libtpu: 0.0.40
codegen_flags: <defaults>
</compile_context>

<pallas_src>
import functools

import jax
import jax.numpy as jnp
from jax.experimental import pallas as pl
from jax.experimental.pallas import tpu as pltpu


def _round_up(x, m):
    return ((x + m - 1) // m) * m


def _dice_rows_kernel(p_ref, t_ref, loss_ref, num_acc, den_acc, *, smooth):
    """Grid = (row tiles [parallel], spatial tiles [arbitrary reduction, last])."""
    k = pl.program_id(1)

    @pl.when(k == 0)
    def _():
        num_acc[...] = jnp.zeros_like(num_acc)
        den_acc[...] = jnp.zeros_like(den_acc)

    # Upcast (inputs may be bf16) and accumulate in f32.
    p = p_ref[...].astype(jnp.float32)
    t = t_ref[...].astype(jnp.float32)
    num_acc[...] += jnp.sum(p * t, axis=1, keepdims=True)
    den_acc[...] += jnp.sum(p + t, axis=1, keepdims=True)   # p-norm with p = 1

    @pl.when(k == pl.num_programs(1) - 1)
    def _():
        num = 2.0 * num_acc[...] + smooth
        den = den_acc[...] + smooth
        loss_ref[...] = 1.0 - num * pl.reciprocal(den, approx=False)


def _per_row_dice_loss(predict_2d, target_2d, *, smooth=1.0,
                       tile=2048, row_tile=256):
    """predict_2d/target_2d: [R, F] -> per-row binary dice loss [R, 1] (f32)."""
    R, F = predict_2d.shape

    # --- choose block sizes and zero-pad so blocks divide the padded dims ---
    # Spatial: large lane-dense tile (amortizes ~0.35us/step grid overhead);
    # shrink for small F so we don't pad tiny feature maps up to 2048.
    tile = min(_round_up(tile, 128), _round_up(F, 128))
    F_pad = _round_up(F, tile)
    # Rows: multiple of 16 (bf16 sublane packing), capped at row_tile so VMEM
    # footprint is independent of R and v7x can megacore-shard the row axis.
    row_tile = min(_round_up(row_tile, 16), _round_up(R, 16))
    R_pad = _round_up(R, row_tile)

    if (R_pad, F_pad) != (R, F):
        # Zero padding is exact: contributes 0 to both num and den sums;
        # fully-padded rows are sliced off below.
        predict_2d = jnp.pad(predict_2d, ((0, R_pad - R), (0, F_pad - F)))
        target_2d = jnp.pad(target_2d, ((0, R_pad - R), (0, F_pad - F)))

    grid = (R_pad // row_tile, F_pad // tile)
    kernel = functools.partial(_dice_rows_kernel, smooth=float(smooth))

    out = pl.pallas_call(
        kernel,
        out_shape=jax.ShapeDtypeStruct((R_pad, 1), jnp.float32),
        grid_spec=pltpu.PrefetchScalarGridSpec(
            num_scalar_prefetch=0,
            grid=grid,
            in_specs=[
                pl.BlockSpec((row_tile, tile), lambda r, k: (r, k)),
                pl.BlockSpec((row_tile, tile), lambda r, k: (r, k)),
            ],
            # Same output block across the spatial axis -> resident accumulator.
            out_specs=pl.BlockSpec((row_tile, 1), lambda r, k: (r, 0)),
            scratch_shapes=[
                pltpu.VMEM((row_tile, 1), jnp.float32),
                pltpu.VMEM((row_tile, 1), jnp.float32),
            ],
        ),
        compiler_params=pltpu.CompilerParams(
            dimension_semantics=("parallel", "arbitrary"),
            # Explicit limit: above the 16/32 MiB scoped defaults (v5e / v6e,v7x),
            # comfortably under v7x's 64 MiB physical VMEM. Double-buffered f32
            # inputs at (256, 2048) are only 2*2*256*2048*4 B = 8 MiB.
            vmem_limit_bytes=48 * 1024 * 1024,
        ),
    )(predict_2d, target_2d)
    return out[:R]


def dice_loss(predict, target, *, smooth=1.0, weight=None, ignore_index=None,
              input_dtype=None, tile=2048, row_tile=256):
    """JAX/Pallas equivalent of DiceLoss(weight, ignore_index)(predict, target).

    predict/target: [N, C, *spatial], same shape. BinaryDiceLoss defaults
    (smooth=1, p=1, reduction='mean'), matching DiceLoss(**{}) in the reference.
    `input_dtype=jnp.bfloat16` halves HBM traffic; accumulation stays in f32.
    """
    assert predict.shape == target.shape, "predict & target shape do not match"
    N, C = predict.shape[0], predict.shape[1]
    F = 1
    for d in predict.shape[2:]:
        F *= d

    if input_dtype is not None:
        predict = predict.astype(input_dtype)
        target = target.astype(input_dtype)

    p2d = predict.reshape(N * C, F)
    t2d = target.reshape(N * C, F)

    per_row = _per_row_dice_loss(p2d, t2d, smooth=smooth,
                                 tile=tile, row_tile=row_tile)   # [N*C, 1]
    per_nc = per_row.reshape(N, C)                               # [N, C]
    per_class = jnp.mean(per_nc, axis=0)                         # reduction='mean'

    if weight is not None:
        per_class = per_class * weight                           # weight: [C,]

    if ignore_index is not None:
        # Reference divides by (C - 1) when ignore_index is set.
        mask = jnp.arange(C) != ignore_index
        total = jnp.sum(jnp.where(mask, per_class, 0.0))
        denom = C - 1
    else:
        total = jnp.sum(per_class)
        denom = C
    return total / denom


def _reference_dice_loss(predict, target, *, smooth=1.0):
    """Pure-jnp reference mirroring the PyTorch module (defaults)."""
    N, C = predict.shape[0], predict.shape[1]
    p = predict.reshape(N, C, -1)
    t = target.reshape(N, C, -1)
    total = 0.0
    for i in range(C):
        num = 2.0 * jnp.sum(p[:, i] * t[:, i], axis=1) + smooth
        den = jnp.sum(p[:, i] + t[:, i], axis=1) + smooth
        total = total + jnp.mean(1.0 - num / den)
    return total / C


if __name__ == "__main__":
    key = jax.random.PRNGKey(0)
    k1, k2 = jax.random.split(key)

    N, C, H, W = 2, 4, 16, 16
    # predict: softmax-like probabilities; target: one-hot over classes.
    logits = jax.random.normal(k1, (N, C, H, W), dtype=jnp.float32)
    predict = jax.nn.softmax(logits, axis=1)
    labels = jax.random.randint(k2, (N, H, W), 0, C)
    target = jax.nn.one_hot(labels, C, axis=1, dtype=jnp.float32)

    ref = _reference_dice_loss(predict, target)

    # f32 path (exact vs reference).
    out = jax.block_until_ready(jax.jit(dice_loss)(predict, target))
    assert jnp.allclose(out, ref, atol=1e-5, rtol=1e-5), (out, ref)

    # bf16-fed path (half the HBM bytes, f32 accumulation in-kernel).
    out_bf16 = jax.block_until_ready(
        jax.jit(functools.partial(dice_loss, input_dtype=jnp.bfloat16))(
            predict, target))
    assert jnp.allclose(out_bf16, ref, atol=2e-2, rtol=2e-2), (out_bf16, ref)

    print("KERNEL_OK")
</pallas_src>

<mosaic_0001>
module attributes {stable_mosaic.version = 11 : i64} {
  func.func @_dice_rows_kernel(%arg0: i32, %arg1: i32, %arg2: memref<16x256xf32, #tpu.memory_space<vmem>>, %arg3: memref<16x256xf32, #tpu.memory_space<vmem>>, %arg4: memref<16x1xf32, #tpu.memory_space<vmem>>, %arg5: memref<16x1xf32, #tpu.memory_space<vmem>>, %arg6: memref<16x1xf32, #tpu.memory_space<vmem>>) attributes {dimension_semantics = [#tpu.dimension_semantics<parallel>, #tpu.dimension_semantics<arbitrary>], iteration_bounds = array<i64: 1, 1>, scalar_prefetch = 0 : i64, scratch_operands = 2 : i64, tpu.core_type = #tpu.core_type<tc>, window_params = [{transform_indices = @transform_0, window_bounds = array<i64: 16, 256>}, {transform_indices = @transform_1, window_bounds = array<i64: 16, 256>}, {transform_indices = @transform_2, window_bounds = array<i64: 16, 1>}]} {
    %c0_i32 = arith.constant 0 : i32
    %0 = arith.cmpi eq, %arg1, %c0_i32 : i32
    %1 = arith.extui %0 : i1 to i32
    %c0_i32_0 = arith.constant 0 : i32
    %2 = arith.cmpi ne, %1, %c0_i32_0 : i32
    scf.if %2 {
      %cst_15 = arith.constant 0.000000e+00 : f32
      %20 = vector.broadcast %cst_15 : f32 to vector<16x1xf32>
      %c0_16 = arith.constant 0 : index
      %c0_17 = arith.constant 0 : index
      %21 = vector.load %arg5[%c0_16, %c0_17] : memref<16x1xf32, #tpu.memory_space<vmem>>, vector<16x1xf32>
      tpu.vector_store %arg5[%c0_16, %c0_17], %20 {strides = array<i32>} : memref<16x1xf32, #tpu.memory_space<vmem>>, vector<16x1xf32>,
      %cst_18 = arith.constant 0.000000e+00 : f32
      %22 = vector.broadcast %cst_18 : f32 to vector<16x1xf32>
      %c0_19 = arith.constant 0 : index
      %c0_20 = arith.constant 0 : index
      %23 = vector.load %arg6[%c0_19, %c0_20] : memref<16x1xf32, #tpu.memory_space<vmem>>, vector<16x1xf32>
      tpu.vector_store %arg6[%c0_19, %c0_20], %22 {strides = array<i32>} : memref<16x1xf32, #tpu.memory_space<vmem>>, vector<16x1xf32>,
    } else {
    }
    %c0 = arith.constant 0 : index
    %c0_1 = arith.constant 0 : index
    %3 = vector.load %arg2[%c0, %c0_1] : memref<16x256xf32, #tpu.memory_space<vmem>>, vector<16x256xf32>
    %c0_2 = arith.constant 0 : index
    %c0_3 = arith.constant 0 : index
    %4 = vector.load %arg3[%c0_2, %c0_3] : memref<16x256xf32, #tpu.memory_space<vmem>>, vector<16x256xf32>
    %c0_4 = arith.constant 0 : index
    %c0_5 = arith.constant 0 : index
    %5 = vector.load %arg5[%c0_4, %c0_5] : memref<16x1xf32, #tpu.memory_space<vmem>>, vector<16x1xf32>
    %6 = arith.mulf %3, %4 : vector<16x256xf32>
    %cst = arith.constant dense<0.000000e+00> : vector<16xf32>
    %7 = vector.multi_reduction <add>, %6, %cst [1] : vector<16x256xf32> to vector<16xf32>
    %8 = vector.shape_cast %7 : vector<16xf32> to vector<16x1xf32>
    %9 = arith.addf %5, %8 : vector<16x1xf32>
    %c0_6 = arith.constant 0 : index
    %c0_7 = arith.constant 0 : index
    %10 = vector.load %arg5[%c0_6, %c0_7] : memref<16x1xf32, #tpu.memory_space<vmem>>, vector<16x1xf32>
    tpu.vector_store %arg5[%c0_6, %c0_7], %9 {strides = array<i32>} : memref<16x1xf32, #tpu.memory_space<vmem>>, vector<16x1xf32>,
    %c0_8 = arith.constant 0 : index
    %c0_9 = arith.constant 0 : index
    %11 = vector.load %arg6[%c0_8, %c0_9] : memref<16x1xf32, #tpu.memory_space<vmem>>, vector<16x1xf32>
    %12 = arith.addf %3, %4 : vector<16x256xf32>
    %cst_10 = arith.constant dense<0.000000e+00> : vector<16xf32>
    %13 = vector.multi_reduction <add>, %12, %cst_10 [1] : vector<16x256xf32> to vector<16xf32>
    %14 = vector.shape_cast %13 : vector<16xf32> to vector<16x1xf32>
    %15 = arith.addf %11, %14 : vector<16x1xf32>
    %c0_11 = arith.constant 0 : index
    %c0_12 = arith.constant 0 : index
    %16 = vector.load %arg6[%c0_11, %c0_12] : memref<16x1xf32, #tpu.memory_space<vmem>>, vector<16x1xf32>
    tpu.vector_store %arg6[%c0_11, %c0_12], %15 {strides = array<i32>} : memref<16x1xf32, #tpu.memory_space<vmem>>, vector<16x1xf32>,
    %c0_i32_13 = arith.constant 0 : i32
    %17 = arith.cmpi eq, %arg1, %c0_i32_13 : i32
    %18 = arith.extui %17 : i1 to i32
    %c0_i32_14 = arith.constant 0 : i32
    %19 = arith.cmpi ne, %18, %c0_i32_14 : i32
    scf.if %19 {
      %c0_15 = arith.constant 0 : index
      %c0_16 = arith.constant 0 : index
      %20 = vector.load %arg5[%c0_15, %c0_16] : memref<16x1xf32, #tpu.memory_space<vmem>>, vector<16x1xf32>
      %cst_17 = arith.constant 2.000000e+00 : f32
      %21 = vector.broadcast %cst_17 : f32 to vector<16x1xf32>
      %22 = arith.mulf %21, %20 : vector<16x1xf32>
      %cst_18 = arith.constant 1.000000e+00 : f32
      %23 = vector.broadcast %cst_18 : f32 to vector<16x1xf32>
      %24 = arith.addf %22, %23 : vector<16x1xf32>
      %c0_19 = arith.constant 0 : index
      %c0_20 = arith.constant 0 : index
      %25 = vector.load %arg6[%c0_19, %c0_20] : memref<16x1xf32, #tpu.memory_space<vmem>>, vector<16x1xf32>
      %cst_21 = arith.constant 1.000000e+00 : f32
      %26 = vector.broadcast %cst_21 : f32 to vector<16x1xf32>
      %27 = arith.addf %25, %26 : vector<16x1xf32>
      %28 = tpu.reciprocal %27 : vector<16x1xf32> -> vector<16x1xf32>
      %29 = arith.mulf %24, %28 : vector<16x1xf32>
      %cst_22 = arith.constant 1.000000e+00 : f32
      %30 = vector.broadcast %cst_22 : f32 to vector<16x1xf32>
      %31 = arith.subf %30, %29 : vector<16x1xf32>
      %c0_23 = arith.constant 0 : index
      %c0_24 = arith.constant 0 : index
      %32 = vector.load %arg4[%c0_23, %c0_24] : memref<16x1xf32, #tpu.memory_space<vmem>>, vector<16x1xf32>
      tpu.vector_store %arg4[%c0_23, %c0_24], %31 {strides = array<i32>} : memref<16x1xf32, #tpu.memory_space<vmem>>, vector<16x1xf32>,
    } else {
    }
    return
  }
  func.func @transform_0(%arg0: i32, %arg1: i32) -> (i32, i32) {
    %c0_i32 = arith.constant 0 : i32
    return %arg0, %arg1 : i32, i32
  }
  func.func @transform_1(%arg0: i32, %arg1: i32) -> (i32, i32) {
    %c0_i32 = arith.constant 0 : i32
    return %arg0, %arg1 : i32, i32
  }
  func.func @transform_2(%arg0: i32, %arg1: i32) -> (i32, i32) {
    %c0_i32 = arith.constant 0 : i32
    %c0_i32_0 = arith.constant 0 : i32
    return %arg0, %c0_i32 : i32, i32
  }
}

</mosaic_0001>

<bundles_post_ra>
// kernel: dice_loss.1
= control target key start
LH: loop header
LB: loop body
LE: loop exit
PB: predicated region body
PF: predicated region fallthrough
CT: control target
= control target key end

     0   :  { %vm15_vm0 = vcmask 7168   ;;  %v91_v3 = vmov 0.0   ;;  %s147_s0 = inlined_call_operand.vmem [shape: f32[16,256], index: 0, kind: input, shape index: {}]   ;;  %s148_s1 = inlined_call_operand.vmem [shape: f32[16,256], index: 1, kind: input, shape index: {}]   ;;  %s149_s2 = inlined_call_operand.vmem [shape: f32[16,1], index: 2, kind: output, shape index: {}]  }
   0x1   :  { %v20_v0 = vld [vmem:[%s147_s0] sm:$0xff]  ;;  %v21_v1 = vld [vmem:[%s147_s0 + $0x8] sm:$0xff]  ;;  %18 = vst.msk [vmem:[#allocation3] sm:$0xff] %vm15_vm0, %v91_v3  ;;  %16 = vst.msk [vmem:[#allocation2] sm:$0xff] %vm15_vm0, %v91_v3 }
   0x2   :  { %v24_v2 = vld [vmem:[%s148_s1] sm:$0xff]  ;;  %17 = vst.msk [vmem:[#allocation2 + $0x8] sm:$0xff] %vm15_vm0, %v91_v3  ;;  %19 = vst.msk [vmem:[#allocation3 + $0x8] sm:$0xff] %vm15_vm0, %v91_v3  ;;  %v25_v4 = vld [vmem:[%s148_s1 + $0x8] sm:$0xff] }
   0x3   :  { %v47_v5 = vadd.f32 %v24_v2, %v20_v0  ;;  %v22_v6 = vld [vmem:[%s147_s0 + $0x10] sm:$0xff]  ;;  %v23_v7 = vld [vmem:[%s147_s0 + $0x18] sm:$0xff]  ;;  %v30_v8 = vmul.f32 %v24_v2, %v20_v0  ;;  %v48_v9 = vadd.f32 %v25_v4, %v21_v1  ;;  %v31_v12 = vmul.f32 %v25_v4, %v21_v1 }
   0x4   :  { %v26_v10 = vld [vmem:[%s148_s1 + $0x10] sm:$0xff]  ;;  %v27_v11 = vld [vmem:[%s148_s1 + $0x18] sm:$0xff] }
   0x5   :  { %v49_v13 = vadd.f32 %v26_v10, %v22_v6  ;;  %v50_v14 = vadd.f32 %v27_v11, %v23_v7  ;;  %v32_v15 = vmul.f32 %v26_v10, %v22_v6  ;;  %v33_v16 = vmul.f32 %v27_v11, %v23_v7 }
   0x6   :  { %v51_v17 = vadd.f32 %v48_v9, %v47_v5  ;;  %v34_v18 = vadd.f32 %v31_v12, %v30_v8 }
   0x7   :  { %v54_v19 = vadd.f32 %v50_v14, %v49_v13  ;;  %v37_v20 = vadd.f32 %v33_v16, %v32_v15 }
   0x8   :  { %52 = vadd.xlane.f32.xlu0 %v51_v17  ;;  %35 = vadd.xlane.f32.xlu1 %v34_v18  ;;  %v45_v21 = vld [vmem:[#allocation3] sm:$0xff]  ;;  %v28_v22 = vld [vmem:[#allocation2] sm:$0xff] }
   0x9   :  { %v46_v27 = vld [vmem:[#allocation3 + $0x8] sm:$0xff]  ;;  %v29_v28 = vld [vmem:[#allocation2 + $0x8] sm:$0xff] }
   0xc   :  { %55 = vadd.xlane.f32.xlu0 %v54_v19  ;;  %38 = vadd.xlane.f32.xlu1 %v37_v20 }
  0x95   :  { %v53_v23 = vpop.xlane.xlu0 %52  ;;  %v36_v24 = vpop.xlane.xlu1 %35 }
  0x96   :  { %v57_v25 = vadd.f32 %v53_v23, %v45_v21  ;;  %v40_v26 = vadd.f32 %v36_v24, %v28_v22 }
  0x98   :  { %59 = vst.msk [vmem:[#allocation3] sm:$0xff] %vm15_vm0, %v57_v25  ;;  %43 = vst.msk [vmem:[#allocation2] sm:$0xff] %vm15_vm0, %v40_v26 }
  0x99   :  { %v56_v29 = vpop.xlane.xlu0 %55  ;;  %v39_v30 = vpop.xlane.xlu1 %38 }
  0x9a   :  { %v58_v31 = vadd.f32 %v56_v29, %v46_v27  ;;  %v41_v32 = vadd.f32 %v39_v30, %v29_v28 }
  0x9c   :  { %60 = vst.msk [vmem:[#allocation3 + $0x8] sm:$0xff] %vm15_vm0, %v58_v31  ;;  %44 = vst.msk [vmem:[#allocation2 + $0x8] sm:$0xff] %vm15_vm0, %v41_v32 }
  0x9f   :  { %v70_v33 = vld [vmem:[#allocation3] sm:$0xff]  ;;  %v64_v35 = vld [vmem:[#allocation2] sm:$0xff] }
  0xa0   :  { %v72_v34 = vadd.f32 1.0, %v70_v33  ;;  %v66_v38 = vmul.f32 2.0, %v64_v35 }
  0xa2   :  { %87 = vrcp.f32 %v72_v34  ;;  %v68_v40 = vadd.f32 1.0, %v66_v38 }
  0xa3   :  { %v71_v36 = vld [vmem:[#allocation3 + $0x8] sm:$0xff]  ;;  %v65_v39 = vld [vmem:[#allocation2 + $0x8] sm:$0xff] }
  0xa4   :  { %v73_v37 = vadd.f32 1.0, %v71_v36  ;;  %v67_v41 = vmul.f32 2.0, %v65_v39 }
  0xa6   :  { %89 = vrcp.f32 %v73_v37  ;;  %v69_v44 = vadd.f32 1.0, %v67_v41 }
  0xac   :  { %v88_v42 = vpop.eup %87 }
  0xad   :  { %v76_v43 = vmul.f32 %v88_v42, %v68_v40 }
  0xaf   :  { %v78_v45 = vsub.f32 1.0, %v76_v43 }
  0xb0   :  { %v90_v46 = vpop.eup %89 }
  0xb1   :  { %80 = vst.msk [vmem:[%s149_s2] sm:$0xff] %vm15_vm0, %v78_v45  ;;  %v77_v47 = vmul.f32 %v90_v46, %v69_v44 }
  0xb3   :  { %v79_v48 = vsub.f32 1.0, %v77_v47 }
  0xb5   :  { %81 = vst.msk [vmem:[%s149_s2 + $0x8] sm:$0xff] %vm15_vm0, %v79_v48 }

</bundles_post_ra>
